<compile_context>
chip_gen: v5e
topology: v5e:2x2
jax: 0.10.0
libtpu: 0.0.40
codegen_flags: <defaults>
</compile_context>

<pallas_src>
import jax
import jax.numpy as jnp
from jax.experimental import pallas as pl
from jax.experimental.pallas import tpu as pltpu


def sine_mlp_kernel(x_ref, w1_ref, b1_ref, w2_ref, b2_ref, w3_ref, b3_ref, o_ref):
    x = x_ref[...]                                    # (1, T)  batch on lanes

    # Layer 1: Linear(1, 40).  K = 1 contraction -> pure VPU broadcast mul+add.
    h1 = w1_ref[...] * x + b1_ref[...]                # (40,1)*(1,T)+(40,1) -> (40,T)
    h1 = jnp.maximum(h1, 0.0)

    # Layer 2: Linear(40, 40) on the MXU, f32 accumulation.
    h2 = jnp.dot(w2_ref[...], h1,
                 preferred_element_type=jnp.float32) + b2_ref[...]   # (40,T)
    h2 = jnp.maximum(h2, 0.0)

    # Layer 3: Linear(40, 1) -> lane-dense (1, T) output slab.
    out = jnp.dot(w3_ref[...], h2,
                  preferred_element_type=jnp.float32) + b3_ref[...]  # (1,T)
    o_ref[...] = out.astype(o_ref.dtype)


def _round_up(n, m):
    return ((n + m - 1) // m) * m


def sine_model_forward(x, params, *, batch_tile=None):
    """x: (N, 1) float32.  params in native torch layout:
       w1 (40,1), b1 (40,1), w2 (40,40), b2 (40,1), w3 (1,40), b3 (1,1)."""
    N, f_in = x.shape
    assert f_in == 1
    w1, b1, w2, b2, w3, b3 = (params[k] for k in ("w1", "b1", "w2", "b2", "w3", "b3"))
    H = w2.shape[0]   # 40

    # Lane-dense tile: multiple of 128, large enough to amortize per-step
    # overhead, capped so very large N still produces >=2 parallel grid steps
    # (megacore on v7x) without any VMEM pressure ((40, 4096) f32 ~ 640 KiB).
    if batch_tile is None:
        batch_tile = min(4096, _round_up(N, 128))
    assert batch_tile % 128 == 0

    n_pad = _round_up(N, batch_tile)
    x_t = x.reshape(1, N)
    if n_pad != N:
        x_t = jnp.pad(x_t, ((0, 0), (0, n_pad - N)))

    grid = (n_pad // batch_tile,)

    in_specs = [
        pl.BlockSpec((1, batch_tile), lambda i: (0, i)),   # x tile (batch on lanes)
        pl.BlockSpec((H, 1), lambda i: (0, 0)),            # w1 (40,1)
        pl.BlockSpec((H, 1), lambda i: (0, 0)),            # b1 (40,1)
        pl.BlockSpec((H, H), lambda i: (0, 0)),            # w2 (40,40)
        pl.BlockSpec((H, 1), lambda i: (0, 0)),            # b2 (40,1)
        pl.BlockSpec((1, H), lambda i: (0, 0)),            # w3 (1,40)
        pl.BlockSpec((1, 1), lambda i: (0, 0)),            # b3 (1,1)
    ]
    out_spec = pl.BlockSpec((1, batch_tile), lambda i: (0, i))

    out_t = pl.pallas_call(
        sine_mlp_kernel,
        out_shape=jax.ShapeDtypeStruct((1, n_pad), x.dtype),
        grid_spec=pl.GridSpec(
            grid=grid,
            in_specs=in_specs,
            out_specs=out_spec,
        ),
        compiler_params=pltpu.CompilerParams(
            dimension_semantics=("parallel",),
        ),
    )(x_t, w1, b1, w2, b2, w3, b3)

    # Drop batch padding and restore the (N, 1) torch-style output shape.
    return out_t[:, :N].reshape(N, 1)


def init_params(key):
    """nn.Linear-style init, weights kept in torch (out_features, in_features) layout;
    biases stored as columns (out_features, 1) for features-on-sublanes broadcasting."""
    k1, k2, k3, k4, k5, k6 = jax.random.split(key, 6)

    def uniform(k, shape, fan_in):
        bound = 1.0 / jnp.sqrt(jnp.array(fan_in, jnp.float32))
        return jax.random.uniform(k, shape, jnp.float32, -bound, bound)

    return {
        "w1": uniform(k1, (40, 1), 1),
        "b1": uniform(k2, (40, 1), 1),
        "w2": uniform(k3, (40, 40), 40),
        "b2": uniform(k4, (40, 1), 40),
        "w3": uniform(k5, (1, 40), 40),
        "b3": uniform(k6, (1, 1), 40),
    }


if __name__ == "__main__":
    key = jax.random.PRNGKey(0)
    pkey, xkey = jax.random.split(key)
    params = init_params(pkey)

    N = 16  # batch of scalar inputs, shape (N, 1) like the torch module expects
    x = jax.random.uniform(xkey, (N, 1), jnp.float32, -5.0, 5.0)

    out = sine_model_forward(x, params)
    out = jax.block_until_ready(out)

    # Reference check in plain JAX (same math as F.linear + relu chain, torch layout).
    ref = jnp.maximum(x @ params["w1"].T + params["b1"].T, 0.0)
    ref = jnp.maximum(ref @ params["w2"].T + params["b2"].T, 0.0)
    ref = ref @ params["w3"].T + params["b3"].T
    assert out.shape == (N, 1)
    assert jnp.allclose(out, ref, atol=1e-5, rtol=1e-5)

    print("KERNEL_OK")
</pallas_src>

<mosaic_0001>
module attributes {stable_mosaic.version = 11 : i64} {
  func.func @sine_mlp_kernel(%arg0: i32, %arg1: memref<1x128xf32, #tpu.memory_space<vmem>>, %arg2: memref<40x1xf32, #tpu.memory_space<vmem>>, %arg3: memref<40x1xf32, #tpu.memory_space<vmem>>, %arg4: memref<40x40xf32, #tpu.memory_space<vmem>>, %arg5: memref<40x1xf32, #tpu.memory_space<vmem>>, %arg6: memref<1x40xf32, #tpu.memory_space<vmem>>, %arg7: memref<1x1xf32, #tpu.memory_space<vmem>>, %arg8: memref<1x128xf32, #tpu.memory_space<vmem>>) attributes {dimension_semantics = [#tpu.dimension_semantics<parallel>], iteration_bounds = array<i64: 1>, scalar_prefetch = 0 : i64, scratch_operands = 0 : i64, tpu.core_type = #tpu.core_type<tc>, window_params = [{transform_indices = @transform_0, window_bounds = array<i64: 1, 128>}, {pipeline_mode = #tpu.pipeline_mode<synchronous>, transform_indices = @transform_1, window_bounds = array<i64: 40, 1>}, {pipeline_mode = #tpu.pipeline_mode<synchronous>, transform_indices = @transform_2, window_bounds = array<i64: 40, 1>}, {pipeline_mode = #tpu.pipeline_mode<synchronous>, transform_indices = @transform_3, window_bounds = array<i64: 40, 40>}, {pipeline_mode = #tpu.pipeline_mode<synchronous>, transform_indices = @transform_4, window_bounds = array<i64: 40, 1>}, {pipeline_mode = #tpu.pipeline_mode<synchronous>, transform_indices = @transform_5, window_bounds = array<i64: 1, 40>}, {pipeline_mode = #tpu.pipeline_mode<synchronous>, transform_indices = @transform_6, window_bounds = array<i64: 1, 1>}, {transform_indices = @transform_7, window_bounds = array<i64: 1, 128>}]} {
    %c0 = arith.constant 0 : index
    %c0_0 = arith.constant 0 : index
    %0 = vector.load %arg1[%c0, %c0_0] : memref<1x128xf32, #tpu.memory_space<vmem>>, vector<1x128xf32>
    %c0_1 = arith.constant 0 : index
    %c0_2 = arith.constant 0 : index
    %1 = vector.load %arg2[%c0_1, %c0_2] : memref<40x1xf32, #tpu.memory_space<vmem>>, vector<40x1xf32>
    %2 = vector.broadcast %1 : vector<40x1xf32> to vector<40x128xf32>
    %3 = vector.broadcast %0 : vector<1x128xf32> to vector<40x128xf32>
    %4 = arith.mulf %2, %3 : vector<40x128xf32>
    %c0_3 = arith.constant 0 : index
    %c0_4 = arith.constant 0 : index
    %5 = vector.load %arg3[%c0_3, %c0_4] : memref<40x1xf32, #tpu.memory_space<vmem>>, vector<40x1xf32>
    %6 = vector.broadcast %5 : vector<40x1xf32> to vector<40x128xf32>
    %7 = arith.addf %4, %6 : vector<40x128xf32>
    %cst = arith.constant 0.000000e+00 : f32
    %8 = vector.broadcast %cst : f32 to vector<40x128xf32>
    %9 = arith.maximumf %7, %8 : vector<40x128xf32>
    %c0_5 = arith.constant 0 : index
    %c0_6 = arith.constant 0 : index
    %10 = vector.load %arg4[%c0_5, %c0_6] : memref<40x40xf32, #tpu.memory_space<vmem>>, vector<40x40xf32>
    %cst_7 = arith.constant dense<0.000000e+00> : vector<40x128xf32>
    %11 = tpu.matmul %10, %9, %cst_7 {dimension_numbers = #tpu.dot_dimension_numbers<[1], [0], [0], [1], [0, 0, 1, 1], [], []>} : vector<40x40xf32>, vector<40x128xf32>, vector<40x128xf32> -> vector<40x128xf32>
    %c0_8 = arith.constant 0 : index
    %c0_9 = arith.constant 0 : index
    %12 = vector.load %arg5[%c0_8, %c0_9] : memref<40x1xf32, #tpu.memory_space<vmem>>, vector<40x1xf32>
    %13 = vector.broadcast %12 : vector<40x1xf32> to vector<40x128xf32>
    %14 = arith.addf %11, %13 : vector<40x128xf32>
    %cst_10 = arith.constant 0.000000e+00 : f32
    %15 = vector.broadcast %cst_10 : f32 to vector<40x128xf32>
    %16 = arith.maximumf %14, %15 : vector<40x128xf32>
    %c0_11 = arith.constant 0 : index
    %c0_12 = arith.constant 0 : index
    %17 = vector.load %arg6[%c0_11, %c0_12] : memref<1x40xf32, #tpu.memory_space<vmem>>, vector<1x40xf32>
    %cst_13 = arith.constant dense<0.000000e+00> : vector<1x128xf32>
    %18 = tpu.matmul %17, %16, %cst_13 {dimension_numbers = #tpu.dot_dimension_numbers<[1], [0], [0], [1], [0, 0, 1, 1], [], []>} : vector<1x40xf32>, vector<40x128xf32>, vector<1x128xf32> -> vector<1x128xf32>
    %c0_14 = arith.constant 0 : index
    %c0_15 = arith.constant 0 : index
    %19 = vector.load %arg7[%c0_14, %c0_15] : memref<1x1xf32, #tpu.memory_space<vmem>>, vector<1x1xf32>
    %20 = vector.broadcast %19 : vector<1x1xf32> to vector<1x128xf32>
    %21 = arith.addf %18, %20 : vector<1x128xf32>
    %c0_16 = arith.constant 0 : index
    %c0_17 = arith.constant 0 : index
    %22 = vector.load %arg8[%c0_16, %c0_17] : memref<1x128xf32, #tpu.memory_space<vmem>>, vector<1x128xf32>
    tpu.vector_store %arg8[%c0_16, %c0_17], %21 {strides = array<i32>} : memref<1x128xf32, #tpu.memory_space<vmem>>, vector<1x128xf32>,
    return
  }
  func.func @transform_0(%arg0: i32) -> (i32, i32) {
    %c0_i32 = arith.constant 0 : i32
    %c0_i32_0 = arith.constant 0 : i32
    return %c0_i32, %arg0 : i32, i32
  }
  func.func @transform_1(%arg0: i32) -> (i32, i32) {
    %c0_i32 = arith.constant 0 : i32
    %c0_i32_0 = arith.constant 0 : i32
    %c0_i32_1 = arith.constant 0 : i32
    return %c0_i32, %c0_i32_0 : i32, i32
  }
  func.func @transform_2(%arg0: i32) -> (i32, i32) {
    %c0_i32 = arith.constant 0 : i32
    %c0_i32_0 = arith.constant 0 : i32
    %c0_i32_1 = arith.constant 0 : i32
    return %c0_i32, %c0_i32_0 : i32, i32
  }
  func.func @transform_3(%arg0: i32) -> (i32, i32) {
    %c0_i32 = arith.constant 0 : i32
    %c0_i32_0 = arith.constant 0 : i32
    %c0_i32_1 = arith.constant 0 : i32
    return %c0_i32, %c0_i32_0 : i32, i32
  }
  func.func @transform_4(%arg0: i32) -> (i32, i32) {
    %c0_i32 = arith.constant 0 : i32
    %c0_i32_0 = arith.constant 0 : i32
    %c0_i32_1 = arith.constant 0 : i32
    return %c0_i32, %c0_i32_0 : i32, i32
  }
  func.func @transform_5(%arg0: i32) -> (i32, i32) {
    %c0_i32 = arith.constant 0 : i32
    %c0_i32_0 = arith.constant 0 : i32
    %c0_i32_1 = arith.constant 0 : i32
    return %c0_i32, %c0_i32_0 : i32, i32
  }
  func.func @transform_6(%arg0: i32) -> (i32, i32) {
    %c0_i32 = arith.constant 0 : i32
    %c0_i32_0 = arith.constant 0 : i32
    %c0_i32_1 = arith.constant 0 : i32
    return %c0_i32, %c0_i32_0 : i32, i32
  }
  func.func @transform_7(%arg0: i32) -> (i32, i32) {
    %c0_i32 = arith.constant 0 : i32
    %c0_i32_0 = arith.constant 0 : i32
    return %c0_i32, %arg0 : i32, i32
  }
}

</mosaic_0001>

<bundles_post_ra>
// kernel: tpu_custom_call.1
= control target key start
LH: loop header
LB: loop body
LE: loop exit
PB: predicated region body
PF: predicated region fallthrough
CT: control target
= control target key end

     0   :  { %s412_s0 = inlined_call_operand.vmem [shape: f32[1,128], index: 0, kind: input, shape index: {}]   ;;  %s413_s1 = inlined_call_operand.vmem [shape: f32[40,1], index: 1, kind: input, shape index: {}]   ;;  %s414_s2 = inlined_call_operand.vmem [shape: f32[40,1], index: 2, kind: input, shape index: {}]   ;;  %s415_s3 = inlined_call_operand.vmem [shape: f32[40,40], index: 3, kind: input, shape index: {}]   ;;  %s416_s4 = inlined_call_operand.vmem [shape: f32[40,1], index: 4, kind: input, shape index: {}]   ;;  %s417_s5 = inlined_call_operand.vmem [shape: f32[1,40], index: 5, kind: input, shape index: {}]   ;;  %s418_s6 = inlined_call_operand.<no memory space> [shape: f32[1,1], index: 6, kind: input, shape index: {}]   ;;  %s419_s7 = inlined_call_operand.hbm [shape: f32[1,128], index: 7, kind: output, shape index: {}]  }
   0x1   :  { %v12_v0 = vstv %s418_s6 }
   0x2   :  { %13 = vst [vmem:[#allocation2] sm:$0x1] %v12_v0 }
   0x3   :  { %v71_v1 = vld [vmem:[%s414_s2 + $0x18] sm:$0xff]  ;;  %v72_v2 = vld [vmem:[%s414_s2 + $0x20] sm:$0xff]  ;;  %v292_v4 = vmov 0  }
   0x4   :  { %v34_v3 = vld [vmem:[%s413_s1 + $0x20] sm:$0xff]  ;;  %264 = vset.pattern.permute.xlu2 %v292_v4  ;;  %263 = vset.pattern.permute.xlu1 %v292_v4 }
   0x5   :  { %262 = vset.pattern.permute.xlu0 %v292_v4  ;;  %90 = vperm.xlu2 %264, %v71_v1  }
   0x6   :  { %95 = vperm.xlu1 %263, %v72_v2   ;;  %57 = vperm.xlu0 %262, %v34_v3  }
   0x7   :  { %14 = vsyncpa [#allocation4], 0  ;;  %v31_v5 = vld [vmem:[%s413_s1 + $0x8] sm:$0xff]  ;;  %v33_v6 = vld [vmem:[%s413_s1 + $0x18] sm:$0xff]  ;;  %vm143_vm0 = vcmask 326656   ;;  %s293_s17 = smov [#allocation3]  }
   0x8   :  { %v32_v7 = vld [vmem:[%s413_s1 + $0x10] sm:$0xff]  ;;  %v69_v8 = vld [vmem:[%s414_s2 + $0x8] sm:$0xff]  ;;  %v30_v10 = vld [vmem:[%s413_s1] sm:$0xff]  ;;  %s233_s18 = sshll.u32 %s293_s17, 4  ;;  %s235_s21 = sshll.u32 %s419_s7, 4  ;;  %s234_s18 = int_to_ptr.vmem [resolvable:$true] %s233_s18  ;;  %s236_s21 = int_to_ptr.hbm [resolvable:$true] %s235_s21 }
   0x9   :  { %v70_v9 = vld [vmem:[%s414_s2 + $0x10] sm:$0xff]  ;;  %v116_v11 = vld [vmem:[%s416_s4 + $0x18] sm:$0xff]  ;;  %v68_v12 = vld [vmem:[%s414_s2] sm:$0xff] }
   0xa   :  { %v117_v13 = vld [vmem:[%s416_s4 + $0x20] sm:$0xff]  ;;  %v115_v15 = vld [vmem:[%s416_s4 + $0x10] sm:$0xff]  ;;  %v114_v16 = vld [vmem:[%s416_s4 + $0x8] sm:$0xff] }
   0xb   :  { %v113_v14 = vld [vmem:[%s416_s4] sm:$0xff]  ;;  %v110_v45 = vld [vmem:[%s415_s3 + $0x10] sm:$0xff]  ;;  %v111_v46 = vld [vmem:[%s415_s3 + $0x18] sm:$0xff] }
   0xc   :  { %v197_v17 = vld [vmem:[#allocation2] sm:$0x1]  ;;  %v109_v47 = vld [vmem:[%s415_s3 + $0x8] sm:$0xff] }
   0xd   :  { %42 = vperm.xlu2 %264, %v31_v5   ;;  %v265_v19 = vld [vmem:[%s412_s0] ss:$0 sm:$0xff] }
   0xe   :  { %52 = vperm.xlu0 %262, %v33_v6   ;;  %47 = vperm.xlu1 %263, %v32_v7   ;;  %v108_v44 = vld [vmem:[%s415_s3] sm:$0xff] }
   0xf   :  { %v112_v48 = vld [vmem:[%s415_s3 + $0x20] sm:$0xff] }
  0x10   :  { %v196_v5 = vld [vmem:[%s417_s5] sm:$0x1] }
  0x15   :  { %80 = vperm.xlu2 %264, %v69_v8  }
  0x16   :  { %85 = vperm.xlu0 %262, %v70_v9   ;;  %37 = vperm.xlu1 %263, %v30_v10  }
  0x1d   :  { %135 = vperm.xlu2 %264, %v116_v11  }
  0x1e   :  { %75 = vperm.xlu0 %262, %v68_v12   ;;  %140 = vperm.xlu1 %263, %v117_v13  }
  0x25   :  { %120 = vperm.xlu2 %264, %v113_v14  }
  0x26   :  { %130 = vperm.xlu0 %262, %v115_v15   ;;  %125 = vperm.xlu1 %263, %v114_v16  }
  0x2e   :  { %200 = vperm.xlu0 %262, %v197_v17  }
  0x5f   :  { %v91_v18 = vpop.permute.xlu2 %90 }
  0x67   :  { %v43_v25 = vpop.permute.xlu2 %42 }
  0x68   :  { %v64_v30 = vmul.f32 %v265_v19, %v43_v25 }
  0x6f   :  { %v81_v33 = vpop.permute.xlu2 %80 }
  0x70   :  { %v99_v35 = vadd.f32 %v81_v33, %v64_v30 }
  0x72   :  { %v104_v39 = vmax.f32 %v99_v35, 0.0 }
  0x77   :  { %v136_v52 = vpop.permute.xlu2 %135 }
  0x78   :  { %v96_v20 = vpop.permute.xlu1 %95  ;;  %v58_v21 = vpop.permute.xlu0 %57 }
  0x79   :  { %v67_v22 = vmul.f32 %v265_v19, %v58_v21 }
  0x7b   :  { %v102_v23 = vadd.f32 %v96_v20, %v67_v22 }
  0x7d   :  { %v107_v24 = vmax.f32 %v102_v23, 0.0 }
  0x7f   :  { %170 = vmatpush.msra.mxu0 %v107_v24  ;;  %250 = vmatpush.msra.mxu2 %v107_v24  ;;  %v121_v0 = vpop.permute.xlu2 %120 }
  0x80   :  { %251 = vmatpush.msra.mxu3 %v107_v24  ;;  %v53_v26 = vpop.permute.xlu0 %52  ;;  %v48_v28 = vpop.permute.xlu1 %47 }
  0x81   :  { %v66_v27 = vmul.f32 %v265_v19, %v53_v26  ;;  %v65_v32 = vmul.f32 %v265_v19, %v48_v28 }
  0x83   :  { %v101_v29 = vadd.f32 %v91_v18, %v66_v27 }
  0x85   :  { %v106_v31 = vmax.f32 %v101_v29, 0.0 }
  0x87   :  { %171 = vmatpush.msra.mxu0 %v106_v31  ;;  %252 = vmatpush.msra.mxu2 %v106_v31 }
  0x88   :  { %253 = vmatpush.msra.mxu3 %v106_v31  ;;  %v86_v34 = vpop.permute.xlu0 %85  ;;  %v38_v38 = vpop.permute.xlu1 %37 }
  0x89   :  { %v100_v36 = vadd.f32 %v86_v34, %v65_v32  ;;  %v63_v40 = vmul.f32 %v265_v19, %v38_v38 }
  0x8b   :  { %v105_v37 = vmax.f32 %v100_v36, 0.0 }
  0x8d   :  { %172 = vmatpush.msra.mxu0 %v105_v37  ;;  %254 = vmatpush.msra.mxu2 %v105_v37 }
  0x8e   :  { %255 = vmatpush.msra.mxu3 %v105_v37 }
  0x8f   :  { %173 = vmatpush.msra.mxu0 %v104_v39  ;;  %256 = vmatpush.msra.mxu2 %v104_v39 }
  0x90   :  { %257 = vmatpush.msra.mxu3 %v104_v39  ;;  %v76_v41 = vpop.permute.xlu0 %75  ;;  %v141_v51 = vpop.permute.xlu1 %140 }
  0x91   :  { %v98_v42 = vadd.f32 %v76_v41, %v63_v40 }
  0x93   :  { %v103_v43 = vmax.f32 %v98_v42, 0.0 }
  0x95   :  { %174 = vmatpush.msra.mxu0 %v103_v43  ;;  %258 = vmatpush.msra.mxu2 %v103_v43 }
  0x96   :  { %259 = vmatpush.msra.mxu3 %v103_v43  ;;  %244 = vmatmul.msk.f32.vlgmr.msra.gmra.mxu0 %vm143_vm0, %v108_v44 }
  0x97   :  { %246 = vmatmul.msk.f32.vlgmr.msra.gmra.mxu2 %vm143_vm0, %v110_v45  ;;  %247 = vmatmul.msk.f32.vlgmr.msra.gmra.mxu3 %vm143_vm0, %v111_v46 }
  0x98   :  { %v131_v57 = vpop.permute.xlu0 %130  ;;  %v126_v61 = vpop.permute.xlu1 %125 }
  0x9e   :  { %245 = vmatmul.msk.f32.gmra.mxu0 %vm143_vm0, %v109_v47 }
  0x9f   :  { %248 = vmatmul.msk.f32.gmra.mxu3 %vm143_vm0, %v112_v48 }
  0xa0   :  { %v201_v6 = vpop.permute.xlu0 %200 }
  0xa1   :  { %v203_v7 = vperm.slane %v201_v6, 0 }
 0x113   :  { %v176_v49 = vpop.f32.mrf.mxu0 }
 0x114   :  { %v177_v1 = vadd.f32 %v176_v49, %v121_v0 }
 0x116   :  { %v191_v4 = vmax.f32 %v177_v1, 0.0 }
 0x11a   :  { %v185_v50 = vpop.f32.mrf.mxu3  ;;  %v182_v53 = vpop.f32.mrf.mxu2 }
 0x11b   :  { %v186_v55 = vadd.f32 %v185_v50, %v136_v52  ;;  %v179_v58 = vpop.f32.mrf.mxu0  ;;  %v183_v59 = vadd.f32 %v182_v53, %v131_v57 }
 0x11c   :  { %v180_v63 = vadd.f32 %v179_v58, %v126_v61 }
 0x11d   :  { %v194_v62 = vmax.f32 %v186_v55, 0.0  ;;  %v193_v2 = vmax.f32 %v183_v59, 0.0 }
 0x11e   :  { %v192_v3 = vmax.f32 %v180_v63, 0.0 }
 0x122   :  { %v188_v54 = vpop.f32.mrf.mxu3 }
 0x123   :  { %v189_v56 = vadd.f32 %v188_v54, %v141_v51 }
 0x125   :  { %v195_v60 = vmax.f32 %v189_v56, 0.0 }
 0x127   :  { %218 = vmatpush.msra.mxu1 %v195_v60 }
 0x129   :  { %219 = vmatpush.msra.mxu1 %v194_v62 }
 0x12b   :  { %220 = vmatpush.msra.mxu1 %v193_v2 }
 0x12d   :  { %221 = vmatpush.msra.mxu1 %v192_v3 }
 0x12f   :  { %222 = vmatpush.msra.mxu1 %v191_v4 }
 0x130   :  { %249 = vmatmul.msk.f32.vlgmr.msra.gmra.mxu1 %vm143_vm0, %v196_v5 }
 0x1ad   :  { %v224_v8 = vpop.f32.mrf.mxu1 }
 0x1ae   :  { %v225_v9 = vadd.f32 %v224_v8, %v203_v7 }
 0x1b0   :  { %227 = vst [vmem:[#allocation3] sm:$0x1] %v225_v9 }
 0x1b1   :  { %238 = dma.vmem_to_hbm [thread:$0]  %s234_s18, 16, %s236_s21, [#allocation4]  }
 0x1b2   :  { %290 = dma.done.wait [#allocation4], 16  }
 0x1b3   :  { %291 = vsyncadd [#allocation4], 4294967280 }
 0x1b4   :  { %243 = vsyncpa [#allocation4], 1 }

</bundles_post_ra>
